<compile_context>
chip_gen: v7x
topology: tpu7x:2x2x1
jax: 0.10.0
libtpu: 0.0.40
codegen_flags: <defaults>
</compile_context>

<pallas_src>
import functools

import jax
import jax.numpy as jnp
from jax.experimental import pallas as pl
from jax.experimental.pallas import tpu as pltpu

_LANE = 128      # minimum lane padding granule
_SUBLANE = 8     # batch rows padded to a multiple of this


def _round_up(x, m):
    return ((x + m - 1) // m) * m


def _tpu_defaults():
    """Generation-aware tiling / VMEM-budget defaults (safe fallback if unknown)."""
    cfg = dict(vmem_cap=52 << 20, batch_tile=512, pad_granule=128, min_tiles=1)
    try:
        kind = jax.devices()[0].device_kind.lower()
    except Exception:
        return cfg
    if "v5" in kind and ("lite" in kind or "5e" in kind):
        # v5e: 128 MiB VMEM, single TC, 128-wide MXU -> big tiles, 128 padding.
        cfg.update(vmem_cap=100 << 20, batch_tile=1024, pad_granule=128, min_tiles=1)
    elif "v6" in kind:
        # v6e: 128 MiB VMEM, single TC, 2x256^2 MXU.
        cfg.update(vmem_cap=100 << 20, batch_tile=512, pad_granule=256, min_tiles=1)
    elif "7" in kind:
        # v7x: 64 MiB VMEM per TC, 2 TCs -> smaller tiles, need >=2 grid tiles.
        cfg.update(vmem_cap=52 << 20, batch_tile=256, pad_granule=256, min_tiles=2)
    return cfg


# ----------------------------- fused Pallas kernel ---------------------------
def _fused_ae_kernel(x_ref, b_ref, *refs, n_enc: int, n_dec: int, out_dims_p):
    """One launch for the whole AE: activations stay in VMEM across all layers."""
    n_layers = n_enc + n_dec
    w_refs = refs[:n_layers]                       # pre-transposed [in_p, out_p] weights
    out_ref, lat_ref = refs[n_layers], refs[n_layers + 1]

    h = x_ref[...]                                 # (tb, din_p), compute dtype
    for i in range(n_layers):
        w = w_refs[i][...]
        dout_p = out_dims_p[i]
        b = b_ref[i:i + 1, :dout_p]                # (1, dout_p), f32, static slice
        h = jnp.dot(h.astype(w.dtype), w, preferred_element_type=jnp.float32)
        h = h + b                                  # bias add in f32
        if i < n_enc - 1:
            h = jnp.where(h > 0, h, 0.2 * h)       # LeakyReLU(0.2), f32 (v5e-safe)
        if i == n_enc - 1:
            lat_ref[...] = h.astype(lat_ref.dtype)  # latent = encoder output (no act)
    out_ref[...] = h.astype(out_ref.dtype)


# ------------------------- parameter init / packing --------------------------
def init_deep_ae_params(key, input_dim, hiddens):
    """PyTorch-style raw params: W is [out, in], b is [out] (nn.Linear default init)."""
    channels = [input_dim] + list(hiddens)
    depth = len(hiddens)
    params = {"encoder": [], "decoder": []}

    for i in range(depth):                              # encoder: ch[i] -> ch[i+1]
        fan_in, fan_out = channels[i], channels[i + 1]
        key, kw, kb = jax.random.split(key, 3)
        bound = 1.0 / jnp.sqrt(fan_in)
        w = jax.random.uniform(kw, (fan_out, fan_in), jnp.float32, -bound, bound)
        b = jax.random.uniform(kb, (fan_out,), jnp.float32, -bound, bound)
        params["encoder"].append((w, b))

    for i in range(depth, 0, -1):                       # decoder: ch[i] -> ch[i-1]
        fan_in, fan_out = channels[i], channels[i - 1]
        key, kw, kb = jax.random.split(key, 3)
        bound = 1.0 / jnp.sqrt(fan_in)
        w = jax.random.uniform(kw, (fan_out, fan_in), jnp.float32, -bound, bound)
        b = jax.random.uniform(kb, (fan_out,), jnp.float32, -bound, bound)
        params["decoder"].append((w, b))

    return params


def prepare_kernel_params(params, compute_dtype=jnp.float32, pad_granule=None):
    """One-time packing (done at init, NOT per forward):
      * W transposed -> [in_p, out_p], zero-padded to lane-dense dims,
      * all biases stacked into a single (n_layers, max_out_p) f32 array,
      * compute_dtype=bf16 halves weight HBM/VMEM traffic on v6e/v7x
        (MXU accumulation and the bias/LeakyReLU epilogue stay f32)."""
    if pad_granule is None:
        pad_granule = _tpu_defaults()["pad_granule"]

    def pad_dim(d):
        # 256 granule only for genuinely large dims on v6e/v7x (2x256^2 MXU);
        # keep 128 for small dims (e.g. a 16-wide latent) to avoid FLOP blow-up.
        if pad_granule > _LANE and d > _LANE:
            return _round_up(d, pad_granule)
        return _round_up(d, _LANE)

    raw = list(params["encoder"]) + list(params["decoder"])
    weights, out_dims_p = [], []
    for (w, b) in raw:
        dout, din = w.shape
        din_p, dout_p = pad_dim(din), pad_dim(dout)
        wt = jnp.zeros((din_p, dout_p), compute_dtype)
        wt = wt.at[:din, :dout].set(w.T.astype(compute_dtype))
        weights.append(wt)
        out_dims_p.append(dout_p)

    max_out_p = max(out_dims_p)
    b_all = jnp.zeros((len(raw), max_out_p), jnp.float32)   # biases tiny -> keep f32
    for i, (_, b) in enumerate(raw):
        b_all = b_all.at[i, : b.shape[0]].set(b.astype(jnp.float32))

    packed = {"weights": weights, "biases": b_all, "out_dims_p": tuple(out_dims_p)}
    meta = {
        "n_enc": len(params["encoder"]),
        "n_dec": len(params["decoder"]),
        "input_dim": params["encoder"][0][0].shape[1],
        "latent_dim": params["encoder"][-1][0].shape[0],
        "output_dim": params["decoder"][-1][0].shape[0],
    }
    return packed, meta


# --------------------------------- forward -----------------------------------
def deep_ae_forward_fused(packed, meta, x, *, batch_tile=None, out_dtype=None):
    """forward(x) -> (output, latent), single pallas_call over a batch grid."""
    w_list = packed["weights"]
    b_all = packed["biases"]
    out_dims_p = packed["out_dims_p"]
    n_enc, n_dec = meta["n_enc"], meta["n_dec"]
    n_layers = n_enc + n_dec

    B, Din = x.shape
    assert Din == meta["input_dim"]

    cfg = _tpu_defaults()
    compute_dtype = w_list[0].dtype
    out_dtype = x.dtype if out_dtype is None else out_dtype

    din_p = w_list[0].shape[0]
    lat_p = out_dims_p[n_enc - 1]
    out_p = out_dims_p[-1]
    max_dim_p = max(din_p, *out_dims_p)

    # ---- VMEM accounting (conservative: weights counted double-buffered) ----
    in_item = jnp.dtype(compute_dtype).itemsize
    out_item = jnp.dtype(out_dtype).itemsize
    w_bytes2 = 2 * sum(int(w.size) * w.dtype.itemsize for w in w_list)
    b_bytes = 2 * _round_up(n_layers, _SUBLANE) * int(b_all.shape[1]) * 4
    per_row = (2 * din_p * in_item            # double-buffered x tile
               + 2 * (out_p + lat_p) * out_item  # double-buffered out/lat tiles
               + 2 * max_dim_p * 4)           # f32 activation temporaries

    budget = int(cfg["vmem_cap"] * 0.85)
    # TODO(synk): if resident weights alone exceed the budget, stream the largest
    # layers (emit_pipeline over output-feature blocks) instead of full residency.
    tb_cap = max(_SUBLANE,
                 ((budget - w_bytes2 - b_bytes) // max(per_row, 1)) // _SUBLANE * _SUBLANE)
    tb_default = cfg["batch_tile"] if batch_tile is None else batch_tile

    B_pad = _round_up(B, _SUBLANE)
    tb = min(_round_up(tb_default, _SUBLANE), tb_cap, B_pad)
    if cfg["min_tiles"] > 1 and B_pad > _SUBLANE:
        # Guarantee >= min_tiles grid steps so both v7x TensorCores get work.
        tb = min(tb, max(_SUBLANE, _round_up(-(-B_pad // cfg["min_tiles"]), _SUBLANE)))
    tb = max(tb, _SUBLANE)
    B_pad = _round_up(B_pad, tb)
    grid = (B_pad // tb,)

    footprint = w_bytes2 + b_bytes + tb * per_row
    vmem_limit = int(min(cfg["vmem_cap"],
                         max(32 << 20, int(footprint * 1.25) + (2 << 20))))

    # Input tile stored directly in compute dtype (halves x traffic when bf16).
    x_p = jnp.zeros((B_pad, din_p), compute_dtype).at[:B, :Din].set(
        x.astype(compute_dtype))

    out_shape = [
        jax.ShapeDtypeStruct((B_pad, out_p), out_dtype),
        jax.ShapeDtypeStruct((B_pad, lat_p), out_dtype),
    ]
    out_specs = [
        pl.BlockSpec((tb, out_p), lambda i: (i, 0)),
        pl.BlockSpec((tb, lat_p), lambda i: (i, 0)),
    ]

    # Advisory cost hint (padded dims -> slight overestimate; advisory only).
    flops = 2 * B_pad * sum(int(w.shape[0]) * int(w.shape[1]) for w in w_list)
    bytes_accessed = int(
        x_p.size * x_p.dtype.itemsize
        + sum(int(w.size) * w.dtype.itemsize for w in w_list)
        + int(b_all.size) * b_all.dtype.itemsize
        + B_pad * (out_p + lat_p) * jnp.dtype(out_dtype).itemsize
    )
    cost = pl.CostEstimate(flops=flops, transcendentals=0,
                           bytes_accessed=bytes_accessed)

    kernel = functools.partial(_fused_ae_kernel, n_enc=n_enc, n_dec=n_dec,
                               out_dims_p=out_dims_p)

    def _call(single_buffer_weights):
        # Weights/biases are grid-invariant (index_map == (0,0)); single-buffer
        # them so they don't occupy 2x VMEM for zero benefit.
        def const_spec(shape):
            if single_buffer_weights:
                return pl.BlockSpec(shape, lambda i: (0, 0),
                                    pipeline_mode=pl.Buffered(1))
            return pl.BlockSpec(shape, lambda i: (0, 0))

        in_specs = [pl.BlockSpec((tb, din_p), lambda i: (i, 0)),
                    const_spec(b_all.shape)]
        in_specs += [const_spec(w.shape) for w in w_list]

        return pl.pallas_call(
            kernel,
            grid=grid,
            in_specs=in_specs,
            out_specs=out_specs,
            out_shape=out_shape,
            compiler_params=pltpu.CompilerParams(
                dimension_semantics=("parallel",),   # shard batch tiles across TCs
                vmem_limit_bytes=vmem_limit),
            cost_estimate=cost,
        )(x_p, b_all, *w_list)

    try:
        out_pad, lat_pad = _call(True)
    except Exception:
        # Fallback: default double-buffering if pipeline_mode=Buffered(1) is
        # rejected by this JAX/Mosaic version.
        out_pad, lat_pad = _call(False)

    # Strip batch / lane padding.
    output = out_pad[:B, : meta["output_dim"]]
    latent = lat_pad[:B, : meta["latent_dim"]]
    return output, latent


# ----------------------------------- main -------------------------------------
if __name__ == "__main__":
    key = jax.random.PRNGKey(0)

    batch = 8
    input_dim = 32
    hiddens = [64, 16]

    kx, kp = jax.random.split(key)
    x = jax.random.normal(kx, (batch, input_dim), dtype=jnp.float32)
    params = init_deep_ae_params(kp, input_dim, hiddens)

    # Reference computation in plain JAX (raw PyTorch-layout params).
    def ref_forward(params, x):
        depth = len(params["encoder"])
        h = x
        for i, (w, b) in enumerate(params["encoder"]):
            h = h @ w.T + b
            if i < depth - 1:
                h = jnp.where(h > 0, h, 0.2 * h)
        lat = h
        for (w, b) in params["decoder"]:
            h = h @ w.T + b
        return h, lat

    ref_out, ref_lat = ref_forward(params, x)

    # ---- f32 path: strict numerical check -----------------------------------
    packed_f32, meta = prepare_kernel_params(params, compute_dtype=jnp.float32)
    out_f32, lat_f32 = deep_ae_forward_fused(packed_f32, meta, x)
    out_f32, lat_f32 = jax.block_until_ready((out_f32, lat_f32))
    assert out_f32.shape == (batch, input_dim) and lat_f32.shape == (batch, hiddens[-1])
    assert jnp.allclose(out_f32, ref_out, atol=1e-4, rtol=1e-5), "f32 output mismatch"
    assert jnp.allclose(lat_f32, ref_lat, atol=1e-4, rtol=1e-5), "f32 latent mismatch"

    # ---- bf16 path (halved weight traffic, f32 accumulation): relaxed check ---
    packed_bf16, meta_b = prepare_kernel_params(params, compute_dtype=jnp.bfloat16)
    out_bf16, lat_bf16 = deep_ae_forward_fused(packed_bf16, meta_b, x)
    out_bf16, lat_bf16 = jax.block_until_ready((out_bf16, lat_bf16))
    assert jnp.allclose(out_bf16, ref_out, atol=5e-2, rtol=5e-2), "bf16 output mismatch"
    assert jnp.allclose(lat_bf16, ref_lat, atol=5e-2, rtol=5e-2), "bf16 latent mismatch"

    print("KERNEL_OK")
</pallas_src>

<mosaic_0001>
module attributes {stable_mosaic.version = 11 : i64} {
  func.func @_fused_ae_kernel(%arg0: i32, %arg1: memref<8x128xf32, #tpu.memory_space<vmem>>, %arg2: memref<4x128xf32, #tpu.memory_space<vmem>>, %arg3: memref<128x128xf32, #tpu.memory_space<vmem>>, %arg4: memref<128x128xf32, #tpu.memory_space<vmem>>, %arg5: memref<128x128xf32, #tpu.memory_space<vmem>>, %arg6: memref<128x128xf32, #tpu.memory_space<vmem>>, %arg7: memref<8x128xf32, #tpu.memory_space<vmem>>, %arg8: memref<8x128xf32, #tpu.memory_space<vmem>>) attributes {dimension_semantics = [#tpu.dimension_semantics<parallel>], iteration_bounds = array<i64: 1>, scalar_prefetch = 0 : i64, scratch_operands = 0 : i64, tpu.core_type = #tpu.core_type<tc>, window_params = [{transform_indices = @transform_0, window_bounds = array<i64: 8, 128>}, {pipeline_mode = #tpu.pipeline_mode<synchronous>, transform_indices = @transform_1, window_bounds = array<i64: 4, 128>}, {pipeline_mode = #tpu.pipeline_mode<synchronous>, transform_indices = @transform_2, window_bounds = array<i64: 128, 128>}, {pipeline_mode = #tpu.pipeline_mode<synchronous>, transform_indices = @transform_3, window_bounds = array<i64: 128, 128>}, {pipeline_mode = #tpu.pipeline_mode<synchronous>, transform_indices = @transform_4, window_bounds = array<i64: 128, 128>}, {pipeline_mode = #tpu.pipeline_mode<synchronous>, transform_indices = @transform_5, window_bounds = array<i64: 128, 128>}, {transform_indices = @transform_6, window_bounds = array<i64: 8, 128>}, {transform_indices = @transform_7, window_bounds = array<i64: 8, 128>}]} {
    %c0 = arith.constant 0 : index
    %c0_0 = arith.constant 0 : index
    %0 = vector.load %arg1[%c0, %c0_0] : memref<8x128xf32, #tpu.memory_space<vmem>>, vector<8x128xf32>
    %c0_1 = arith.constant 0 : index
    %c0_2 = arith.constant 0 : index
    %1 = vector.load %arg3[%c0_1, %c0_2] : memref<128x128xf32, #tpu.memory_space<vmem>>, vector<128x128xf32>
    %c0_3 = arith.constant 0 : index
    %c0_4 = arith.constant 0 : index
    %2 = vector.load %arg2[%c0_3, %c0_4] : memref<4x128xf32, #tpu.memory_space<vmem>>, vector<1x128xf32>
    %cst = arith.constant dense<0.000000e+00> : vector<8x128xf32>
    %3 = tpu.matmul %0, %1, %cst {dimension_numbers = #tpu.dot_dimension_numbers<[1], [0], [0], [1], [0, 0, 1, 1], [], []>} : vector<8x128xf32>, vector<128x128xf32>, vector<8x128xf32> -> vector<8x128xf32>
    %4 = vector.broadcast %2 : vector<1x128xf32> to vector<8x128xf32>
    %5 = arith.addf %3, %4 : vector<8x128xf32>
    %cst_5 = arith.constant 0.000000e+00 : f32
    %6 = vector.broadcast %cst_5 : f32 to vector<8x128xf32>
    %7 = arith.cmpf ogt, %5, %6 : vector<8x128xf32>
    %cst_6 = arith.constant 2.000000e-01 : f32
    %8 = vector.broadcast %cst_6 : f32 to vector<8x128xf32>
    %9 = arith.mulf %8, %5 : vector<8x128xf32>
    %10 = arith.select %7, %5, %9 : vector<8x128xi1>, vector<8x128xf32>
    %c0_7 = arith.constant 0 : index
    %c0_8 = arith.constant 0 : index
    %11 = vector.load %arg4[%c0_7, %c0_8] : memref<128x128xf32, #tpu.memory_space<vmem>>, vector<128x128xf32>
    %c1 = arith.constant 1 : index
    %c0_9 = arith.constant 0 : index
    %12 = vector.load %arg2[%c1, %c0_9] : memref<4x128xf32, #tpu.memory_space<vmem>>, vector<1x128xf32>
    %cst_10 = arith.constant dense<0.000000e+00> : vector<8x128xf32>
    %13 = tpu.matmul %10, %11, %cst_10 {dimension_numbers = #tpu.dot_dimension_numbers<[1], [0], [0], [1], [0, 0, 1, 1], [], []>} : vector<8x128xf32>, vector<128x128xf32>, vector<8x128xf32> -> vector<8x128xf32>
    %14 = vector.broadcast %12 : vector<1x128xf32> to vector<8x128xf32>
    %15 = arith.addf %13, %14 : vector<8x128xf32>
    %c0_11 = arith.constant 0 : index
    %c0_12 = arith.constant 0 : index
    %16 = vector.load %arg8[%c0_11, %c0_12] : memref<8x128xf32, #tpu.memory_space<vmem>>, vector<8x128xf32>
    tpu.vector_store %arg8[%c0_11, %c0_12], %15 {strides = array<i32>} : memref<8x128xf32, #tpu.memory_space<vmem>>, vector<8x128xf32>,
    %c0_13 = arith.constant 0 : index
    %c0_14 = arith.constant 0 : index
    %17 = vector.load %arg5[%c0_13, %c0_14] : memref<128x128xf32, #tpu.memory_space<vmem>>, vector<128x128xf32>
    %c2 = arith.constant 2 : index
    %c0_15 = arith.constant 0 : index
    %18 = vector.load %arg2[%c2, %c0_15] : memref<4x128xf32, #tpu.memory_space<vmem>>, vector<1x128xf32>
    %cst_16 = arith.constant dense<0.000000e+00> : vector<8x128xf32>
    %19 = tpu.matmul %15, %17, %cst_16 {dimension_numbers = #tpu.dot_dimension_numbers<[1], [0], [0], [1], [0, 0, 1, 1], [], []>} : vector<8x128xf32>, vector<128x128xf32>, vector<8x128xf32> -> vector<8x128xf32>
    %20 = vector.broadcast %18 : vector<1x128xf32> to vector<8x128xf32>
    %21 = arith.addf %19, %20 : vector<8x128xf32>
    %c0_17 = arith.constant 0 : index
    %c0_18 = arith.constant 0 : index
    %22 = vector.load %arg6[%c0_17, %c0_18] : memref<128x128xf32, #tpu.memory_space<vmem>>, vector<128x128xf32>
    %c3 = arith.constant 3 : index
    %c0_19 = arith.constant 0 : index
    %23 = vector.load %arg2[%c3, %c0_19] : memref<4x128xf32, #tpu.memory_space<vmem>>, vector<1x128xf32>
    %cst_20 = arith.constant dense<0.000000e+00> : vector<8x128xf32>
    %24 = tpu.matmul %21, %22, %cst_20 {dimension_numbers = #tpu.dot_dimension_numbers<[1], [0], [0], [1], [0, 0, 1, 1], [], []>} : vector<8x128xf32>, vector<128x128xf32>, vector<8x128xf32> -> vector<8x128xf32>
    %25 = vector.broadcast %23 : vector<1x128xf32> to vector<8x128xf32>
    %26 = arith.addf %24, %25 : vector<8x128xf32>
    %c0_21 = arith.constant 0 : index
    %c0_22 = arith.constant 0 : index
    %27 = vector.load %arg7[%c0_21, %c0_22] : memref<8x128xf32, #tpu.memory_space<vmem>>, vector<8x128xf32>
    tpu.vector_store %arg7[%c0_21, %c0_22], %26 {strides = array<i32>} : memref<8x128xf32, #tpu.memory_space<vmem>>, vector<8x128xf32>,
    return
  }
  func.func @transform_0(%arg0: i32) -> (i32, i32) {
    %c0_i32 = arith.constant 0 : i32
    %c0_i32_0 = arith.constant 0 : i32
    return %arg0, %c0_i32 : i32, i32
  }
  func.func @transform_1(%arg0: i32) -> (i32, i32) {
    %c0_i32 = arith.constant 0 : i32
    %c0_i32_0 = arith.constant 0 : i32
    %c0_i32_1 = arith.constant 0 : i32
    return %c0_i32, %c0_i32_0 : i32, i32
  }
  func.func @transform_2(%arg0: i32) -> (i32, i32) {
    %c0_i32 = arith.constant 0 : i32
    %c0_i32_0 = arith.constant 0 : i32
    %c0_i32_1 = arith.constant 0 : i32
    return %c0_i32, %c0_i32_0 : i32, i32
  }
  func.func @transform_3(%arg0: i32) -> (i32, i32) {
    %c0_i32 = arith.constant 0 : i32
    %c0_i32_0 = arith.constant 0 : i32
    %c0_i32_1 = arith.constant 0 : i32
    return %c0_i32, %c0_i32_0 : i32, i32
  }
  func.func @transform_4(%arg0: i32) -> (i32, i32) {
    %c0_i32 = arith.constant 0 : i32
    %c0_i32_0 = arith.constant 0 : i32
    %c0_i32_1 = arith.constant 0 : i32
    return %c0_i32, %c0_i32_0 : i32, i32
  }
  func.func @transform_5(%arg0: i32) -> (i32, i32) {
    %c0_i32 = arith.constant 0 : i32
    %c0_i32_0 = arith.constant 0 : i32
    %c0_i32_1 = arith.constant 0 : i32
    return %c0_i32, %c0_i32_0 : i32, i32
  }
  func.func @transform_6(%arg0: i32) -> (i32, i32) {
    %c0_i32 = arith.constant 0 : i32
    %c0_i32_0 = arith.constant 0 : i32
    return %arg0, %c0_i32 : i32, i32
  }
  func.func @transform_7(%arg0: i32) -> (i32, i32) {
    %c0_i32 = arith.constant 0 : i32
    %c0_i32_0 = arith.constant 0 : i32
    return %arg0, %c0_i32 : i32, i32
  }
}

module attributes {stable_mosaic.version = 11 : i64} {
  func.func @_fused_ae_kernel(%arg0: i32, %arg1: memref<8x128xf32, #tpu.memory_space<vmem>>, %arg2: memref<4x128xf32, #tpu.memory_space<vmem>>, %arg3: memref<128x128xf32, #tpu.memory_space<vmem>>, %arg4: memref<128x128xf32, #tpu.memory_space<vmem>>, %arg5: memref<128x128xf32, #tpu.memory_space<vmem>>, %arg6: memref<128x128xf32, #tpu.memory_space<vmem>>, %arg7: memref<8x128xf32, #tpu.memory_space<vmem>>, %arg8: memref<8x128xf32, #tpu.memory_space<vmem>>) attributes {dimension_semantics = [#tpu.dimension_semantics<parallel>], iteration_bounds = array<i64: 1>, scalar_prefetch = 0 : i64, scratch_operands = 0 : i64, tpu.core_type = #tpu.core_type<tc>, window_params = [{transform_indices = @transform_0, window_bounds = array<i64: 8, 128>}, {pipeline_mode = #tpu.pipeline_mode<synchronous>, transform_indices = @transform_1, window_bounds = array<i64: 4, 128>}, {pipeline_mode = #tpu.pipeline_mode<synchronous>, transform_indices = @transform_2, window_bounds = array<i64: 128, 128>}, {pipeline_mode = #tpu.pipeline_mode<synchronous>, transform_indices = @transform_3, window_bounds = array<i64: 128, 128>}, {pipeline_mode = #tpu.pipeline_mode<synchronous>, transform_indices = @transform_4, window_bounds = array<i64: 128, 128>}, {pipeline_mode = #tpu.pipeline_mode<synchronous>, transform_indices = @transform_5, window_bounds = array<i64: 128, 128>}, {transform_indices = @transform_6, window_bounds = array<i64: 8, 128>}, {transform_indices = @transform_7, window_bounds = array<i64: 8, 128>}]} {
    %c0 = arith.constant 0 : index
    %c0_0 = arith.constant 0 : index
    %0 = vector.load %arg1[%c0, %c0_0] : memref<8x128xf32, #tpu.memory_space<vmem>>, vector<8x128xf32>
    %c0_1 = arith.constant 0 : index
    %c0_2 = arith.constant 0 : index
    %1 = vector.load %arg3[%c0_1, %c0_2] : memref<128x128xf32, #tpu.memory_space<vmem>>, vector<128x128xf32>
    %c0_3 = arith.constant 0 : index
    %c0_4 = arith.constant 0 : index
    %2 = vector.load %arg2[%c0_3, %c0_4] : memref<4x128xf32, #tpu.memory_space<vmem>>, vector<1x128xf32>
    %cst = arith.constant dense<0.000000e+00> : vector<8x128xf32>
    %3 = tpu.matmul %0, %1, %cst {dimension_numbers = #tpu.dot_dimension_numbers<[1], [0], [0], [1], [0, 0, 1, 1], [], []>} : vector<8x128xf32>, vector<128x128xf32>, vector<8x128xf32> -> vector<8x128xf32>
    %4 = vector.broadcast %2 : vector<1x128xf32> to vector<8x128xf32>
    %5 = arith.addf %3, %4 : vector<8x128xf32>
    %cst_5 = arith.constant 0.000000e+00 : f32
    %6 = vector.broadcast %cst_5 : f32 to vector<8x128xf32>
    %7 = arith.cmpf ogt, %5, %6 : vector<8x128xf32>
    %cst_6 = arith.constant 2.000000e-01 : f32
    %8 = vector.broadcast %cst_6 : f32 to vector<8x128xf32>
    %9 = arith.mulf %8, %5 : vector<8x128xf32>
    %10 = arith.select %7, %5, %9 : vector<8x128xi1>, vector<8x128xf32>
    %c0_7 = arith.constant 0 : index
    %c0_8 = arith.constant 0 : index
    %11 = vector.load %arg4[%c0_7, %c0_8] : memref<128x128xf32, #tpu.memory_space<vmem>>, vector<128x128xf32>
    %c1 = arith.constant 1 : index
    %c0_9 = arith.constant 0 : index
    %12 = vector.load %arg2[%c1, %c0_9] : memref<4x128xf32, #tpu.memory_space<vmem>>, vector<1x128xf32>
    %cst_10 = arith.constant dense<0.000000e+00> : vector<8x128xf32>
    %13 = tpu.matmul %10, %11, %cst_10 {dimension_numbers = #tpu.dot_dimension_numbers<[1], [0], [0], [1], [0, 0, 1, 1], [], []>} : vector<8x128xf32>, vector<128x128xf32>, vector<8x128xf32> -> vector<8x128xf32>
    %14 = vector.broadcast %12 : vector<1x128xf32> to vector<8x128xf32>
    %15 = arith.addf %13, %14 : vector<8x128xf32>
    %c0_11 = arith.constant 0 : index
    %c0_12 = arith.constant 0 : index
    %16 = vector.load %arg8[%c0_11, %c0_12] : memref<8x128xf32, #tpu.memory_space<vmem>>, vector<8x128xf32>
    tpu.vector_store %arg8[%c0_11, %c0_12], %15 {strides = array<i32>} : memref<8x128xf32, #tpu.memory_space<vmem>>, vector<8x128xf32>,
    %c0_13 = arith.constant 0 : index
    %c0_14 = arith.constant 0 : index
    %17 = vector.load %arg5[%c0_13, %c0_14] : memref<128x128xf32, #tpu.memory_space<vmem>>, vector<128x128xf32>
    %c2 = arith.constant 2 : index
    %c0_15 = arith.constant 0 : index
    %18 = vector.load %arg2[%c2, %c0_15] : memref<4x128xf32, #tpu.memory_space<vmem>>, vector<1x128xf32>
    %cst_16 = arith.constant dense<0.000000e+00> : vector<8x128xf32>
    %19 = tpu.matmul %15, %17, %cst_16 {dimension_numbers = #tpu.dot_dimension_numbers<[1], [0], [0], [1], [0, 0, 1, 1], [], []>} : vector<8x128xf32>, vector<128x128xf32>, vector<8x128xf32> -> vector<8x128xf32>
    %20 = vector.broadcast %18 : vector<1x128xf32> to vector<8x128xf32>
    %21 = arith.addf %19, %20 : vector<8x128xf32>
    %c0_17 = arith.constant 0 : index
    %c0_18 = arith.constant 0 : index
    %22 = vector.load %arg6[%c0_17, %c0_18] : memref<128x128xf32, #tpu.memory_space<vmem>>, vector<128x128xf32>
    %c3 = arith.constant 3 : index
    %c0_19 = arith.constant 0 : index
    %23 = vector.load %arg2[%c3, %c0_19] : memref<4x128xf32, #tpu.memory_space<vmem>>, vector<1x128xf32>
    %cst_20 = arith.constant dense<0.000000e+00> : vector<8x128xf32>
    %24 = tpu.matmul %21, %22, %cst_20 {dimension_numbers = #tpu.dot_dimension_numbers<[1], [0], [0], [1], [0, 0, 1, 1], [], []>} : vector<8x128xf32>, vector<128x128xf32>, vector<8x128xf32> -> vector<8x128xf32>
    %25 = vector.broadcast %23 : vector<1x128xf32> to vector<8x128xf32>
    %26 = arith.addf %24, %25 : vector<8x128xf32>
    %c0_21 = arith.constant 0 : index
    %c0_22 = arith.constant 0 : index
    %27 = vector.load %arg7[%c0_21, %c0_22] : memref<8x128xf32, #tpu.memory_space<vmem>>, vector<8x128xf32>
    tpu.vector_store %arg7[%c0_21, %c0_22], %26 {strides = array<i32>} : memref<8x128xf32, #tpu.memory_space<vmem>>, vector<8x128xf32>,
    return
  }
  func.func @transform_0(%arg0: i32) -> (i32, i32) {
    %c0_i32 = arith.constant 0 : i32
    %c0_i32_0 = arith.constant 0 : i32
    return %arg0, %c0_i32 : i32, i32
  }
  func.func @transform_1(%arg0: i32) -> (i32, i32) {
    %c0_i32 = arith.constant 0 : i32
    %c0_i32_0 = arith.constant 0 : i32
    %c0_i32_1 = arith.constant 0 : i32
    return %c0_i32, %c0_i32_0 : i32, i32
  }
  func.func @transform_2(%arg0: i32) -> (i32, i32) {
    %c0_i32 = arith.constant 0 : i32
    %c0_i32_0 = arith.constant 0 : i32
    %c0_i32_1 = arith.constant 0 : i32
    return %c0_i32, %c0_i32_0 : i32, i32
  }
  func.func @transform_3(%arg0: i32) -> (i32, i32) {
    %c0_i32 = arith.constant 0 : i32
    %c0_i32_0 = arith.constant 0 : i32
    %c0_i32_1 = arith.constant 0 : i32
    return %c0_i32, %c0_i32_0 : i32, i32
  }
  func.func @transform_4(%arg0: i32) -> (i32, i32) {
    %c0_i32 = arith.constant 0 : i32
    %c0_i32_0 = arith.constant 0 : i32
    %c0_i32_1 = arith.constant 0 : i32
    return %c0_i32, %c0_i32_0 : i32, i32
  }
  func.func @transform_5(%arg0: i32) -> (i32, i32) {
    %c0_i32 = arith.constant 0 : i32
    %c0_i32_0 = arith.constant 0 : i32
    %c0_i32_1 = arith.constant 0 : i32
    return %c0_i32, %c0_i32_0 : i32, i32
  }
  func.func @transform_6(%arg0: i32) -> (i32, i32) {
    %c0_i32 = arith.constant 0 : i32
    %c0_i32_0 = arith.constant 0 : i32
    return %arg0, %c0_i32 : i32, i32
  }
  func.func @transform_7(%arg0: i32) -> (i32, i32) {
    %c0_i32 = arith.constant 0 : i32
    %c0_i32_0 = arith.constant 0 : i32
    return %arg0, %c0_i32 : i32, i32
  }
}

</mosaic_0001>

<bundles_post_ra>
// kernel: tpu_custom_call.1
= control target key start
LH: loop header
LB: loop body
LE: loop exit
PB: predicated region body
PF: predicated region fallthrough
CT: control target
= control target key end

     0   :  { %13 = vsyncpa [#allocation3], 0  ;;  %s1217_s0 = inlined_call_operand.hbm [shape: f32[8,128], index: 0, kind: input, shape index: {}]   ;;  %s1218_s1 = inlined_call_operand.hbm [shape: f32[4,128], index: 1, kind: input, shape index: {}]   ;;  %s1219_s2 = inlined_call_operand.hbm [shape: f32[128,128], index: 2, kind: input, shape index: {}]   ;;  %s1220_s3 = inlined_call_operand.hbm [shape: f32[128,128], index: 3, kind: input, shape index: {}]   ;;  %s1221_s4 = inlined_call_operand.hbm [shape: f32[128,128], index: 4, kind: input, shape index: {}]   ;;  %s1222_s5 = inlined_call_operand.hbm [shape: f32[128,128], index: 5, kind: input, shape index: {}]   ;;  %s1223_s6 = inlined_call_operand.hbm [shape: f32[8,128], index: 6, kind: output, shape index: {0}]   ;;  %s1224_s7 = inlined_call_operand.hbm [shape: f32[8,128], index: 7, kind: output, shape index: {1}]  }
   0x1   :  { %14 = vsyncpa [#allocation6], 0 }
   0x2   :  { %15 = vsyncpa [#allocation9], 0 }
   0x3   :  { %16 = vsyncpa [#allocation12], 0 }
   0x4   :  { %17 = vsyncpa [#allocation4], 0 }
   0x5   :  { %18 = vsyncpa [#allocation15], 0  ;;  %s1016_s24 = smov [#allocation5]   ;;  %s828_s28 = scalar_lea.hbm %s1218_s1, 64 }
   0x6   :  { %s35_s25 = sshll.u32 %s1016_s24, 4  ;;  %p829_p0 = scmp.ne.s32.totalorder %s1218_s1, %s828_s28  ;;  %s36_s25 = int_to_ptr.vmem [resolvable:$true] %s35_s25 }
   0x7   :  { %p832_p1 = scmp.lt.u32.totalorder %s828_s28, %s1218_s1 }
   0x9   :  { %p834_p2 = pnand %p832_p1, %p829_p0 }
   0xb   :  { %837 = shalt.err (!%p834_p2)
}
   0xc   :  { %s838_s10 = scalar_lea.vmem %s36_s25, 64  ;;  %p843_p4 = scmp.lt.s32.totalorder %s36_s25, %s36_s25 }
   0xd   :  { %p839_p3 = scmp.ne.s32.totalorder %s36_s25, %s838_s10  ;;  %p844_p5 = scmp.lt.s32.totalorder %s838_s10, %s838_s10 }
   0xf   :  { %p845_p6 = por %p844_p5, %p843_p4 }
  0x11   :  { %p846_p7 = pnand %p845_p6, %p839_p3 }
  0x13   :  { %849 = shalt.err (!%p846_p7)
}
  0x14   :  { %38 = dma.hbm_to_vmem [thread:$0]  %s1218_s1, 64, %s36_s25, [#allocation6]  }
  0x15   :  { %s1017_s13 = smov [#allocation8]   ;;  %s1018_s15 = smov [#allocation2]  }
  0x16   :  { %s56_s14 = sshll.u32 %s1017_s13, 4  ;;  %s25_s16 = sshll.u32 %s1018_s15, 4  ;;  %s57_s14 = int_to_ptr.vmem [resolvable:$true] %s56_s14  ;;  %s26_s16 = int_to_ptr.vmem [resolvable:$true] %s25_s16 }
  0x17   :  { %s850_s19 = scalar_lea.hbm %s1220_s3, 2048 }
  0x18   :  { %p851_p8 = scmp.ne.s32.totalorder %s1220_s3, %s850_s19  ;;  %p854_p9 = scmp.lt.u32.totalorder %s850_s19, %s1220_s3 }
  0x1a   :  { %p856_p10 = pnand %p854_p9, %p851_p8 }
  0x1c   :  { %859 = shalt.err (!%p856_p10)
}
  0x1d   :  { %s860_s1 = scalar_lea.vmem %s57_s14, 2048  ;;  %p865_p12 = scmp.lt.s32.totalorder %s57_s14, %s57_s14 }
  0x1e   :  { %p861_p11 = scmp.ne.s32.totalorder %s57_s14, %s860_s1  ;;  %p866_p13 = scmp.lt.s32.totalorder %s860_s1, %s860_s1 }
  0x20   :  { %p867_p0 = por %p866_p13, %p865_p12 }
  0x22   :  { %p868_p1 = pnand %p867_p0, %p861_p11 }
  0x24   :  { %871 = shalt.err (!%p868_p1)
}
  0x25   :  { %s1019_s24 = smov 128   ;;  %s1020_s25 = smov 8  }
  0x26   :  { %62 = dma.hbm_to_vmem [thread:$0]  %s1220_s3, 2048, %s57_s14, [#allocation9], %s1019_s24, %s1019_s24, %s1020_s25  }
  0x27   :  { %s872_s30 = scalar_lea.hbm %s1217_s0, 128 }
  0x28   :  { %p873_p2 = scmp.ne.s32.totalorder %s1217_s0, %s872_s30  ;;  %p876_p3 = scmp.lt.u32.totalorder %s872_s30, %s1217_s0 }
  0x2a   :  { %p878_p4 = pnand %p876_p3, %p873_p2 }
  0x2c   :  { %881 = shalt.err (!%p878_p4)
}
  0x2d   :  { %s882_s12 = scalar_lea.vmem %s26_s16, 128  ;;  %p887_p6 = scmp.lt.s32.totalorder %s26_s16, %s26_s16 }
  0x2e   :  { %p883_p5 = scmp.ne.s32.totalorder %s26_s16, %s882_s12  ;;  %p888_p7 = scmp.lt.s32.totalorder %s882_s12, %s882_s12 }
  0x30   :  { %p889_p8 = por %p888_p7, %p887_p6 }
  0x32   :  { %p890_p9 = pnand %p889_p8, %p883_p5 }
  0x34   :  { %893 = shalt.err (!%p890_p9)
}
  0x35   :  { %28 = dma.hbm_to_vmem [thread:$0]  %s1217_s0, 128, %s26_s16, [#allocation3]  }
  0x36   :  { %s1021_s14 = smov [#allocation7]   ;;  %s1022_s17 = smov [#allocation10]  }
  0x37   :  { %s44_s15 = sshll.u32 %s1021_s14, 4  ;;  %s68_s18 = sshll.u32 %s1022_s17, 4  ;;  %s45_s15 = int_to_ptr.vmem [resolvable:$true] %s44_s15  ;;  %s69_s18 = int_to_ptr.vmem [resolvable:$true] %s68_s18 }
  0x38   :  { %s894_s21 = scalar_lea.hbm %s1219_s2, 2048 }
  0x39   :  { %p895_p10 = scmp.ne.s32.totalorder %s1219_s2, %s894_s21  ;;  %p898_p11 = scmp.lt.u32.totalorder %s894_s21, %s1219_s2 }
  0x3b   :  { %p900_p12 = pnand %p898_p11, %p895_p10 }
  0x3d   :  { %903 = shalt.err (!%p900_p12)
}
  0x3e   :  { %s904_s0 = scalar_lea.vmem %s45_s15, 2048  ;;  %p909_p0 = scmp.lt.s32.totalorder %s45_s15, %s45_s15 }
  0x3f   :  { %p905_p13 = scmp.ne.s32.totalorder %s45_s15, %s904_s0  ;;  %p910_p1 = scmp.lt.s32.totalorder %s904_s0, %s904_s0 }
  0x41   :  { %p911_p2 = por %p910_p1, %p909_p0 }
  0x43   :  { %p912_p3 = pnand %p911_p2, %p905_p13 }
  0x45   :  { %915 = shalt.err (!%p912_p3)
}
  0x46   :  { %50 = dma.hbm_to_vmem [thread:$0]  %s1219_s2, 2048, %s45_s15, [#allocation6], %s1019_s24, %s1019_s24, %s1020_s25  }
  0x47   :  { %s916_s30 = scalar_lea.hbm %s1221_s4, 2048 }
  0x48   :  { %p917_p4 = scmp.ne.s32.totalorder %s1221_s4, %s916_s30  ;;  %p920_p5 = scmp.lt.u32.totalorder %s916_s30, %s1221_s4 }
  0x4a   :  { %p922_p6 = pnand %p920_p5, %p917_p4 }
  0x4c   :  { %925 = shalt.err (!%p922_p6)
}
  0x4d   :  { %s926_s12 = scalar_lea.vmem %s69_s18, 2048  ;;  %p931_p8 = scmp.lt.s32.totalorder %s69_s18, %s69_s18 }
  0x4e   :  { %p927_p7 = scmp.ne.s32.totalorder %s69_s18, %s926_s12  ;;  %p932_p9 = scmp.lt.s32.totalorder %s926_s12, %s926_s12 }
  0x50   :  { %p933_p10 = por %p932_p9, %p931_p8 }
  0x52   :  { %p934_p11 = pnand %p933_p10, %p927_p7 }
  0x54   :  { %937 = shalt.err (!%p934_p11)
}
  0x55   :  { %74 = dma.hbm_to_vmem [thread:$0]  %s1221_s4, 2048, %s69_s18, [#allocation9], %s1019_s24, %s1019_s24, %s1020_s25  }
  0x56   :  { %s1023_s13 = smov [#allocation11]   ;;  %s938_s19 = scalar_lea.hbm %s1222_s5, 2048 }
  0x57   :  { %s80_s14 = sshll.u32 %s1023_s13, 4  ;;  %p939_p12 = scmp.ne.s32.totalorder %s1222_s5, %s938_s19  ;;  %s81_s14 = int_to_ptr.vmem [resolvable:$true] %s80_s14 }
  0x58   :  { %p942_p13 = scmp.lt.u32.totalorder %s938_s19, %s1222_s5 }
  0x5a   :  { %p944_p0 = pnand %p942_p13, %p939_p12 }
  0x5c   :  { %947 = shalt.err (!%p944_p0)
}
  0x5d   :  { %s948_s1 = scalar_lea.vmem %s81_s14, 2048  ;;  %p953_p2 = scmp.lt.s32.totalorder %s81_s14, %s81_s14 }
  0x5e   :  { %p949_p1 = scmp.ne.s32.totalorder %s81_s14, %s948_s1  ;;  %p954_p3 = scmp.lt.s32.totalorder %s948_s1, %s948_s1 }
  0x60   :  { %p955_p4 = por %p954_p3, %p953_p2 }
  0x62   :  { %p956_p5 = pnand %p955_p4, %p949_p1 }
  0x64   :  { %959 = shalt.err (!%p956_p5)
}
  0x65   :  { %86 = dma.hbm_to_vmem [thread:$0]  %s1222_s5, 2048, %s81_s14, [#allocation12], %s1019_s24, %s1019_s24, %s1020_s25  }
  0x66   :  { %1004 = dma.done.wait [#allocation3], 128  }
  0x67   :  { %1005 = vsyncadd [#allocation3], 4294967168 }
  0x68   :  { %1006 = dma.done.wait [#allocation6], 2112  }
  0x69   :  { %1007 = vsyncadd [#allocation6], 4294965184 }
  0x6a   :  { %1008 = dma.done.wait [#allocation9], 4096  }
  0x6b   :  { %1009 = vsyncadd [#allocation9], 4294963200 }
  0x6c   :  { %1010 = dma.done.wait [#allocation12], 2048  }
  0x6d   :  { %1011 = vsyncadd [#allocation12], 4294965248  ;;  %v1024_v0 = vmov 0.0|0.0   ;;  %vm1025_vm0 = vmmov 0   ;;  %v1026_v1 = vmov 0.0   ;;  %v106_v2 = vld [vmem:[#allocation7] sm:$0xff] }
  0x6e   :  { %719 = vmatprep.subr.bf16.mxu0 %v1024_v0  ;;  %611 = vmatprep.mubr.msk.f32.mxu0 %vm1025_vm0, %v1026_v1  ;;  %v107_v3 = vld [vmem:[#allocation7 + $0x8] sm:$0xff]  ;;  %v108_v4 = vld [vmem:[#allocation7 + $0x10] sm:$0xff]  ;;  %v109_v6 = vld [vmem:[#allocation7 + $0x18] sm:$0xff]  ;;  %s1027_s5 = smov [#allocation14]  }
  0x6f   :  { %743 = vmatprep.subr.bf16.mxu1 %v1024_v0  ;;  %646 = vmatprep.mubr.msk.f32.mxu1 %vm1025_vm0, %v1026_v1  ;;  %v720_v5 = vpack.c.bf16 %v107_v3, %v106_v2  ;;  %v723_v7 = vpack.c.bf16 %v109_v6, %v108_v4  ;;  %v110_v8 = vld [vmem:[#allocation7 + $0x20] sm:$0xff]  ;;  %v111_v9 = vld [vmem:[#allocation7 + $0x28] sm:$0xff]  ;;  %v202_v12 = vld [vmem:[#allocation8 + $0x10] sm:$0xff]  ;;  %s491_s24 = sshll.u32 %s1027_s5, 4  ;;  %s492_s24 = int_to_ptr.vmem [resolvable:$true] %s491_s24 }
  0x70   :  { %v200_v10 = vld [vmem:[#allocation8] sm:$0xff]  ;;  %v201_v11 = vld [vmem:[#allocation8 + $0x8] sm:$0xff]  ;;  %v203_v13 = vld [vmem:[#allocation8 + $0x18] sm:$0xff]  ;;  %v726_v14 = vpack.c.bf16 %v111_v9, %v110_v8  ;;  %s960_s25 = scalar_lea.vmem %s492_s24, 128  ;;  %p965_p7 = scmp.lt.s32.totalorder %s492_s24, %s492_s24 }
  0x71   :  { %721 = vmatpush3.bf16.msra.mxu0 %v720_v5  ;;  %v744_v15 = vpack.c.bf16 %v201_v11, %v200_v10  ;;  %v112_v16 = vld [vmem:[#allocation7 + $0x30] sm:$0xff]  ;;  %v113_v17 = vld [vmem:[#allocation7 + $0x38] sm:$0xff]  ;;  %v747_v18 = vpack.c.bf16 %v203_v13, %v202_v12  ;;  %v204_v19 = vld [vmem:[#allocation8 + $0x20] sm:$0xff]  ;;  %p961_p6 = scmp.ne.s32.totalorder %s492_s24, %s960_s25  ;;  %p966_p8 = scmp.lt.s32.totalorder %s960_s25, %s960_s25 }
  0x72   :  { %722 = vmatprep.subr.bf16.mxu0 %v1024_v0  ;;  %v205_v20 = vld [vmem:[#allocation8 + $0x28] sm:$0xff]  ;;  %v729_v21 = vpack.c.bf16 %v113_v17, %v112_v16  ;;  %v114_v22 = vld [vmem:[#allocation7 + $0x40] sm:$0xff]  ;;  %v206_v25 = vld [vmem:[#allocation8 + $0x30] sm:$0xff] }
  0x73   :  { %745 = vmatpush3.bf16.msra.mxu1 %v744_v15  ;;  %v115_v23 = vld [vmem:[#allocation7 + $0x48] sm:$0xff]  ;;  %v750_v24 = vpack.c.bf16 %v205_v20, %v204_v19  ;;  %v207_v26 = vld [vmem:[#allocation8 + $0x38] sm:$0xff]  ;;  %v116_v28 = vld [vmem:[#allocation7 + $0x50] sm:$0xff]  ;;  %p967_p9 = por %p966_p8, %p965_p7 }
  0x74   :  { %746 = vmatprep.subr.bf16.mxu1 %v1024_v0  ;;  %v732_v27 = vpack.c.bf16 %v115_v23, %v114_v22  ;;  %v117_v29 = vld [vmem:[#allocation7 + $0x58] sm:$0xff]  ;;  %v753_v30 = vpack.c.bf16 %v207_v26, %v206_v25  ;;  %v208_v31 = vld [vmem:[#allocation8 + $0x40] sm:$0xff]  ;;  %v209_v32 = vld [vmem:[#allocation8 + $0x48] sm:$0xff] }
  0x75   :  { %724 = vmatpush3.bf16.msra.mxu0 %v723_v7  ;;  %v735_v33 = vpack.c.bf16 %v117_v29, %v116_v28  ;;  %v118_v34 = vld [vmem:[#allocation7 + $0x60] sm:$0xff]  ;;  %v119_v35 = vld [vmem:[#allocation7 + $0x68] sm:$0xff]  ;;  %v756_v36 = vpack.c.bf16 %v209_v32, %v208_v31  ;;  %v210_v37 = vld [vmem:[#allocation8 + $0x50] sm:$0xff]  ;;  %p968_p10 = pnand %p967_p9, %p961_p6 }
  0x76   :  { %725 = vmatprep.subr.bf16.mxu0 %v1024_v0  ;;  %v211_v38 = vld [vmem:[#allocation8 + $0x58] sm:$0xff]  ;;  %v738_v39 = vpack.c.bf16 %v119_v35, %v118_v34  ;;  %v120_v40 = vld [vmem:[#allocation7 + $0x70] sm:$0xff]  ;;  %v212_v43 = vld [vmem:[#allocation8 + $0x60] sm:$0xff] }
  0x77   :  { %748 = vmatpush3.bf16.msra.mxu1 %v747_v18  ;;  %v121_v41 = vld [vmem:[#allocation7 + $0x78] sm:$0xff]  ;;  %v759_v42 = vpack.c.bf16 %v211_v38, %v210_v37  ;;  %v213_v44 = vld [vmem:[#allocation8 + $0x68] sm:$0xff]  ;;  %v214_v48 = vld [vmem:[#allocation8 + $0x70] sm:$0xff] }
  0x78   :  { %749 = vmatprep.subr.bf16.mxu1 %v1024_v0  ;;  %v741_v45 = vpack.c.bf16 %v121_v41, %v120_v40  ;;  %v762_v46 = vpack.c.bf16 %v213_v44, %v212_v43  ;;  %v105_v47 = vld [vmem:[#allocation2] sm:$0xff]  ;;  %v292_v51 = vld [vmem:[#allocation10] sm:$0xff]  ;;  %v293_v52 = vld [vmem:[#allocation10 + $0x8] sm:$0xff] }
  0x79   :  { %727 = vmatpush3.bf16.msra.mxu0 %v726_v14  ;;  %v215_v49 = vld [vmem:[#allocation8 + $0x78] sm:$0xff]  ;;  %v294_v53 = vld [vmem:[#allocation10 + $0x10] sm:$0xff]  ;;  %v768_v54 = vpack.c.bf16 %v293_v52, %v292_v51  ;;  %v296_v57 = vld [vmem:[#allocation10 + $0x20] sm:$0xff] }
  0x7a   :  { %728 = vmatprep.subr.bf16.mxu0 %v1024_v0  ;;  %v765_v50 = vpack.c.bf16 %v215_v49, %v214_v48  ;;  %v295_v55 = vld [vmem:[#allocation10 + $0x18] sm:$0xff]  ;;  %v297_v58 = vld [vmem:[#allocation10 + $0x28] sm:$0xff]  ;;  %v298_v60 = vld [vmem:[#allocation10 + $0x30] sm:$0xff] }
  0x7b   :  { %751 = vmatpush3.bf16.msra.mxu1 %v750_v24  ;;  %v771_v56 = vpack.c.bf16 %v295_v55, %v294_v53  ;;  %v774_v59 = vpack.c.bf16 %v297_v58, %v296_v57  ;;  %v299_v61 = vld [vmem:[#allocation10 + $0x38] sm:$0xff]  ;;  %v300_v63 = vld [vmem:[#allocation10 + $0x40] sm:$0xff]  ;;  %v301_v2 = vld [vmem:[#allocation10 + $0x48] sm:$0xff] }
  0x7c   :  { %752 = vmatprep.subr.bf16.mxu1 %v1024_v0  ;;  %v777_v62 = vpack.c.bf16 %v299_v61, %v298_v60  ;;  %v780_v3 = vpack.c.bf16 %v301_v2, %v300_v63  ;;  %v302_v4 = vld [vmem:[#allocation10 + $0x50] sm:$0xff]  ;;  %v303_v5 = vld [vmem:[#allocation10 + $0x58] sm:$0xff]  ;;  %v304_v7 = vld [vmem:[#allocation10 + $0x60] sm:$0xff] }
  0x7d   :  { %730 = vmatpush3.bf16.msra.mxu0 %v729_v21  ;;  %v783_v6 = vpack.c.bf16 %v303_v5, %v302_v4  ;;  %v305_v8 = vld [vmem:[#allocation10 + $0x68] sm:$0xff]  ;;  %v507_v10 = vld [vmem:[#allocation5] ss:$0 sm:$0xff]  ;;  %v306_v16 = vld [vmem:[#allocation10 + $0x70] sm:$0xff] }
  0x7e   :  { %731 = vmatprep.subr.bf16.mxu0 %v1024_v0  ;;  %v786_v9 = vpack.c.bf16 %v305_v8, %v304_v7  ;;  %v307_v17 = vld [vmem:[#allocation10 + $0x78] sm:$0xff]  ;;  %v383_v19 = vld [vmem:[#allocation11] sm:$0xff]  ;;  %v384_v20 = vld [vmem:[#allocation11 + $0x8] sm:$0xff] }
  0x7f   :  { %754 = vmatpush3.bf16.msra.mxu1 %v753_v30  ;;  %v789_v18 = vpack.c.bf16 %v307_v17, %v306_v16  ;;  %v385_v21 = vld [vmem:[#allocation11 + $0x10] sm:$0xff]  ;;  %v792_v22 = vpack.c.bf16 %v384_v20, %v383_v19  ;;  %v386_v23 = vld [vmem:[#allocation11 + $0x18] sm:$0xff]  ;;  %v387_v25 = vld [vmem:[#allocation11 + $0x20] sm:$0xff] }
  0x80   :  { %755 = vmatprep.subr.bf16.mxu1 %v1024_v0  ;;  %v795_v24 = vpack.c.bf16 %v386_v23, %v385_v21  ;;  %v388_v26 = vld [vmem:[#allocation11 + $0x28] sm:$0xff]  ;;  %v390_v28 = vld [vmem:[#allocation11 + $0x38] sm:$0xff]  ;;  %v391_v30 = vld [vmem:[#allocation11 + $0x40] sm:$0xff] }
  0x81   :  { %733 = vmatpush3.bf16.msra.mxu0 %v732_v27  ;;  %v798_v27 = vpack.c.bf16 %v388_v26, %v387_v25  ;;  %v392_v31 = vld [vmem:[#allocation11 + $0x48] sm:$0xff]  ;;  %v394_v34 = vld [vmem:[#allocation11 + $0x58] sm:$0xff]  ;;  %v397_v43 = vld [vmem:[#allocation11 + $0x70] sm:$0xff] }
  0x82   :  { %734 = vmatprep.subr.bf16.mxu0 %v1024_v0  ;;  %v804_v32 = vpack.c.bf16 %v392_v31, %v391_v30  ;;  %v396_v37 = vld [vmem:[#allocation11 + $0x68] sm:$0xff]  ;;  %v398_v44 = vld [vmem:[#allocation11 + $0x78] sm:$0xff] }
  0x83   :  { %757 = vmatpush3.bf16.msra.mxu1 %v756_v36  ;;  %v395_v36 = vld [vmem:[#allocation11 + $0x60] sm:$0xff] }
  0x84   :  { %758 = vmatprep.subr.bf16.mxu1 %v1024_v0  ;;  %v810_v38 = vpack.c.bf16 %v396_v37, %v395_v36 }
  0x85   :  { %736 = vmatpush3.bf16.msra.mxu0 %v735_v33  ;;  %v393_v33 = vld [vmem:[#allocation11 + $0x50] sm:$0xff] }
  0x86   :  { %737 = vmatprep.subr.bf16.mxu0 %v1024_v0  ;;  %v807_v35 = vpack.c.bf16 %v394_v34, %v393_v33 }
  0x87   :  { %760 = vmatpush3.bf16.msra.mxu1 %v759_v42 }
  0x88   :  { %761 = vmatprep.subr.bf16.mxu1 %v1024_v0 }
  0x89   :  { %739 = vmatpush3.bf16.msra.mxu0 %v738_v39  ;;  %v508_v39 = vld [vmem:[#allocation5 + $0x1] ss:$0 sm:$0xff] }
  0x8a   :  { %740 = vmatprep.subr.bf16.mxu0 %v1024_v0 }
  0x8b   :  { %763 = vmatpush3.bf16.msra.mxu1 %v762_v46  ;;  %v509_v46 = vld [vmem:[#allocation5 + $0x2] ss:$0 sm:$0xff] }
  0x8c   :  { %764 = vmatprep.subr.bf16.mxu1 %v1024_v0 }
  0x8d   :  { %742 = vmatpush3.bf16.msra.mxu0 %v741_v45  ;;  %v813_v45 = vpack.c.bf16 %v398_v44, %v397_v43 }
  0x8e   :  { %767 = vmatprep.subr.bf16.mxu0 %v1024_v0 }
  0x8f   :  { %766 = vmatpush3.bf16.msra.mxu1 %v765_v50 }
  0x90   :  { %612 = vmatmul.mubr.f32.vlgmr.msra.gmra.mrb[0].mxu0 %v105_v47  ;;  %791 = vmatprep.subr.bf16.mxu1 %v1024_v0 }
  0x91   :  { %681 = vmatprep.mubr.msk.f32.mxu0 %vm1025_vm0, %v1026_v1  ;;  %769 = vmatpush3.bf16.msra.mxu0 %v768_v54 }
  0x92   :  { %770 = vmatprep.subr.bf16.mxu0 %v1024_v0 }
  0x95   :  { %772 = vmatpush3.bf16.msra.mxu0 %v771_v56 }
  0x96   :  { %773 = vmatprep.subr.bf16.mxu0 %v1024_v0 }
  0x99   :  { %775 = vmatpush3.bf16.msra.mxu0 %v774_v59 }
  0x9a   :  { %776 = vmatprep.subr.bf16.mxu0 %v1024_v0 }
  0x9d   :  { %778 = vmatpush3.bf16.msra.mxu0 %v777_v62 }
  0x9e   :  { %779 = vmatprep.subr.bf16.mxu0 %v1024_v0 }
  0xa1   :  { %781 = vmatpush3.bf16.msra.mxu0 %v780_v3 }
  0xa2   :  { %782 = vmatprep.subr.bf16.mxu0 %v1024_v0 }
  0xa5   :  { %784 = vmatpush3.bf16.msra.mxu0 %v783_v6 }
  0xa6   :  { %785 = vmatprep.subr.bf16.mxu0 %v1024_v0 }
  0xa9   :  { %787 = vmatpush3.bf16.msra.mxu0 %v786_v9 }
  0xaa   :  { %788 = vmatprep.subr.bf16.mxu0 %v1024_v0 }
  0xad   :  { %790 = vmatpush3.bf16.msra.mxu0 %v789_v18 }
 0x163   :  { %v193_v11 = vpop.f32.mrb[0].mxu0 }
 0x164   :  { %v194_v12 = vadd.f32 %v507_v10, %v193_v11  ;;  %v613_v13 = vpop.f32.mrb[1].mxu0 }
 0x166   :  { %v198_v14 = vmul.f32 0.2, %v194_v12  ;;  %vm197_vm1 = vcmp.gt.f32.partialorder %v194_v12, 0.0 }
 0x168   :  { %v199_v15 = vsel %vm197_vm1, %v194_v12, %v198_v14 }
 0x169   :  { %647 = vmatmul.mubr.f32.vlgmr.msra.gmra.mrb[0].mxu1 %v199_v15 }
 0x16a   :  { %716 = vmatprep.mubr.msk.f32.mxu1 %vm1025_vm0, %v1026_v1  ;;  %793 = vmatpush3.bf16.msra.mxu1 %v792_v22  ;;  %v389_v1 = vld [vmem:[#allocation11 + $0x30] sm:$0xff] }
 0x16b   :  { %794 = vmatprep.subr.bf16.mxu1 %v1024_v0  ;;  %v801_v29 = vpack.c.bf16 %v390_v28, %v389_v1 }
 0x16e   :  { %796 = vmatpush3.bf16.msra.mxu1 %v795_v24 }
 0x16f   :  { %797 = vmatprep.subr.bf16.mxu1 %v1024_v0 }
 0x172   :  { %799 = vmatpush3.bf16.msra.mxu1 %v798_v27 }
 0x173   :  { %800 = vmatprep.subr.bf16.mxu1 %v1024_v0 }
 0x176   :  { %802 = vmatpush3.bf16.msra.mxu1 %v801_v29 }
 0x177   :  { %803 = vmatprep.subr.bf16.mxu1 %v1024_v0 }
 0x17a   :  { %805 = vmatpush3.bf16.msra.mxu1 %v804_v32 }
 0x17b   :  { %806 = vmatprep.subr.bf16.mxu1 %v1024_v0 }
 0x17e   :  { %808 = vmatpush3.bf16.msra.mxu1 %v807_v35 }
 0x17f   :  { %809 = vmatprep.subr.bf16.mxu1 %v1024_v0 }
 0x182   :  { %811 = vmatpush3.bf16.msra.mxu1 %v810_v38 }
 0x183   :  { %812 = vmatprep.subr.bf16.mxu1 %v1024_v0 }
 0x186   :  { %814 = vmatpush3.bf16.msra.mxu1 %v813_v45 }
 0x23c   :  { %v287_v40 = vpop.f32.mrb[0].mxu1 }
 0x23d   :  { %v288_v41 = vadd.f32 %v508_v39, %v287_v40  ;;  %v648_v42 = vpop.f32.mrb[1].mxu1 }
 0x23f   :  { %291 = vst [vmem:[#allocation14] sm:$0xff] %v288_v41  ;;  %682 = vmatmul.mubr.f32.vlgmr.msra.gmra.mrb[2].mxu0 %v288_v41 }
 0x312   :  { %v379_v47 = vpop.f32.mrb[2].mxu0 }
 0x313   :  { %v380_v48 = vadd.f32 %v509_v46, %v379_v47  ;;  %v683_v49 = vpop.f32.mrb[3].mxu0 }
 0x315   :  { %717 = vmatmul.mubr.f32.vlgmr.msra.gmra.mrb[2].mxu1 %v380_v48 }
 0x316   :  { %971 = shalt.err (!%p968_p10)
}
 0x317   :  { %s972_s16 = scalar_lea.hbm %s1224_s7, 128 }
 0x318   :  { %p973_p11 = scmp.ne.s32.totalorder %s1224_s7, %s972_s16  ;;  %p976_p12 = scmp.lt.u32.totalorder %s972_s16, %s1224_s7 }
 0x31a   :  { %p978_p13 = pnand %p976_p12, %p973_p11 }
 0x31c   :  { %981 = shalt.err (!%p978_p13)
}
 0x31d   :  { %494 = dma.vmem_to_hbm [thread:$0]  %s492_s24, 128, %s1224_s7, [#allocation15]   ;;  %v510_v0 = vld [vmem:[#allocation5 + $0x3] ss:$0 sm:$0xff] }
 0x31e   :  { %s1028_s10 = smov [#allocation13]  }
 0x31f   :  { %s481_s11 = sshll.u32 %s1028_s10, 4  ;;  %s482_s11 = int_to_ptr.vmem [resolvable:$true] %s481_s11 }
 0x320   :  { %s982_s12 = scalar_lea.vmem %s482_s11, 128  ;;  %p987_p1 = scmp.lt.s32.totalorder %s482_s11, %s482_s11 }
 0x321   :  { %p983_p0 = scmp.ne.s32.totalorder %s482_s11, %s982_s12  ;;  %p988_p2 = scmp.lt.s32.totalorder %s982_s12, %s982_s12 }
 0x323   :  { %p989_p3 = por %p988_p2, %p987_p1 }
 0x325   :  { %p990_p4 = pnand %p989_p3, %p983_p0 }
 0x3e8   :  { %v470_v50 = vpop.f32.mrb[2].mxu1 }
 0x3e9   :  { %v471_v51 = vadd.f32 %v510_v0, %v470_v50  ;;  %v718_v52 = vpop.f32.mrb[3].mxu1 }
 0x3eb   :  { %474 = vst [vmem:[#allocation13] sm:$0xff] %v471_v51 }
 0x3ec   :  { %993 = shalt.err (!%p990_p4)
}
 0x3ed   :  { %s994_s13 = scalar_lea.hbm %s1223_s6, 128 }
 0x3ee   :  { %p995_p5 = scmp.ne.s32.totalorder %s1223_s6, %s994_s13  ;;  %p998_p6 = scmp.lt.u32.totalorder %s994_s13, %s1223_s6 }
 0x3f0   :  { %p1000_p7 = pnand %p998_p6, %p995_p5 }
 0x3f2   :  { %1003 = shalt.err (!%p1000_p7)
}
 0x3f3   :  { %484 = dma.vmem_to_hbm [thread:$0]  %s482_s11, 128, %s1223_s6, [#allocation4]  }
 0x3f4   :  { %1012 = dma.done.wait [#allocation4], 128  }
 0x3f5   :  { %1013 = vsyncadd [#allocation4], 4294967168 }
 0x3f6   :  { %1014 = dma.done.wait [#allocation15], 128  }
 0x3f7   :  { %1015 = vsyncadd [#allocation15], 4294967168 }
 0x3f8   :  { %501 = vsyncpa [#allocation3], 1 }
 0x3f9   :  { %502 = vsyncpa [#allocation6], 1 }
 0x3fa   :  { %503 = vsyncpa [#allocation9], 1 }
 0x3fb   :  { %504 = vsyncpa [#allocation12], 1 }
 0x3fc   :  { %505 = vsyncpa [#allocation4], 1 }
 0x3fd   :  { %506 = vsyncpa [#allocation15], 1 }

// kernel: tpu_custom_call.1
= control target key start
LH: loop header
LB: loop body
LE: loop exit
PB: predicated region body
PF: predicated region fallthrough
CT: control target
= control target key end

     0   :  { %13 = vsyncpa [#allocation3], 0  ;;  %s1217_s0 = inlined_call_operand.hbm [shape: f32[8,128], index: 0, kind: input, shape index: {}]   ;;  %s1218_s1 = inlined_call_operand.hbm [shape: f32[4,128], index: 1, kind: input, shape index: {}]   ;;  %s1219_s2 = inlined_call_operand.hbm [shape: f32[128,128], index: 2, kind: input, shape index: {}]   ;;  %s1220_s3 = inlined_call_operand.hbm [shape: f32[128,128], index: 3, kind: input, shape index: {}]   ;;  %s1221_s4 = inlined_call_operand.hbm [shape: f32[128,128], index: 4, kind: input, shape index: {}]   ;;  %s1222_s5 = inlined_call_operand.hbm [shape: f32[128,128], index: 5, kind: input, shape index: {}]   ;;  %s1223_s6 = inlined_call_operand.hbm [shape: f32[8,128], index: 6, kind: output, shape index: {0}]   ;;  %s1224_s7 = inlined_call_operand.hbm [shape: f32[8,128], index: 7, kind: output, shape index: {1}]  }
   0x1   :  { %14 = vsyncpa [#allocation6], 0 }
   0x2   :  { %15 = vsyncpa [#allocation9], 0 }
   0x3   :  { %16 = vsyncpa [#allocation12], 0 }
   0x4   :  { %17 = vsyncpa [#allocation4], 0 }
   0x5   :  { %18 = vsyncpa [#allocation15], 0  ;;  %s1016_s24 = smov [#allocation5]   ;;  %s828_s28 = scalar_lea.hbm %s1218_s1, 64 }
   0x6   :  { %s35_s25 = sshll.u32 %s1016_s24, 4  ;;  %p829_p0 = scmp.ne.s32.totalorder %s1218_s1, %s828_s28  ;;  %s36_s25 = int_to_ptr.vmem [resolvable:$true] %s35_s25 }
   0x7   :  { %p832_p1 = scmp.lt.u32.totalorder %s828_s28, %s1218_s1 }
   0x9   :  { %p834_p2 = pnand %p832_p1, %p829_p0 }
   0xb   :  { %837 = shalt.err (!%p834_p2)
}
   0xc   :  { %s838_s10 = scalar_lea.vmem %s36_s25, 64  ;;  %p843_p4 = scmp.lt.s32.totalorder %s36_s25, %s36_s25 }
   0xd   :  { %p839_p3 = scmp.ne.s32.totalorder %s36_s25, %s838_s10  ;;  %p844_p5 = scmp.lt.s32.totalorder %s838_s10, %s838_s10 }
   0xf   :  { %p845_p6 = por %p844_p5, %p843_p4 }
  0x11   :  { %p846_p7 = pnand %p845_p6, %p839_p3 }
  0x13   :  { %849 = shalt.err (!%p846_p7)
}
  0x14   :  { %38 = dma.hbm_to_vmem [thread:$0]  %s1218_s1, 64, %s36_s25, [#allocation6]  }
  0x15   :  { %s1017_s13 = smov [#allocation8]   ;;  %s1018_s15 = smov [#allocation2]  }
  0x16   :  { %s56_s14 = sshll.u32 %s1017_s13, 4  ;;  %s25_s16 = sshll.u32 %s1018_s15, 4  ;;  %s57_s14 = int_to_ptr.vmem [resolvable:$true] %s56_s14  ;;  %s26_s16 = int_to_ptr.vmem [resolvable:$true] %s25_s16 }
  0x17   :  { %s850_s19 = scalar_lea.hbm %s1220_s3, 2048 }
  0x18   :  { %p851_p8 = scmp.ne.s32.totalorder %s1220_s3, %s850_s19  ;;  %p854_p9 = scmp.lt.u32.totalorder %s850_s19, %s1220_s3 }
  0x1a   :  { %p856_p10 = pnand %p854_p9, %p851_p8 }
  0x1c   :  { %859 = shalt.err (!%p856_p10)
}
  0x1d   :  { %s860_s1 = scalar_lea.vmem %s57_s14, 2048  ;;  %p865_p12 = scmp.lt.s32.totalorder %s57_s14, %s57_s14 }
  0x1e   :  { %p861_p11 = scmp.ne.s32.totalorder %s57_s14, %s860_s1  ;;  %p866_p13 = scmp.lt.s32.totalorder %s860_s1, %s860_s1 }
  0x20   :  { %p867_p0 = por %p866_p13, %p865_p12 }
  0x22   :  { %p868_p1 = pnand %p867_p0, %p861_p11 }
  0x24   :  { %871 = shalt.err (!%p868_p1)
}
  0x25   :  { %s1019_s24 = smov 128   ;;  %s1020_s25 = smov 8  }
  0x26   :  { %62 = dma.hbm_to_vmem [thread:$0]  %s1220_s3, 2048, %s57_s14, [#allocation9], %s1019_s24, %s1019_s24, %s1020_s25  }
  0x27   :  { %s872_s30 = scalar_lea.hbm %s1217_s0, 128 }
  0x28   :  { %p873_p2 = scmp.ne.s32.totalorder %s1217_s0, %s872_s30  ;;  %p876_p3 = scmp.lt.u32.totalorder %s872_s30, %s1217_s0 }
  0x2a   :  { %p878_p4 = pnand %p876_p3, %p873_p2 }
  0x2c   :  { %881 = shalt.err (!%p878_p4)
}
  0x2d   :  { %s882_s12 = scalar_lea.vmem %s26_s16, 128  ;;  %p887_p6 = scmp.lt.s32.totalorder %s26_s16, %s26_s16 }
  0x2e   :  { %p883_p5 = scmp.ne.s32.totalorder %s26_s16, %s882_s12  ;;  %p888_p7 = scmp.lt.s32.totalorder %s882_s12, %s882_s12 }
  0x30   :  { %p889_p8 = por %p888_p7, %p887_p6 }
  0x32   :  { %p890_p9 = pnand %p889_p8, %p883_p5 }
  0x34   :  { %893 = shalt.err (!%p890_p9)
}
  0x35   :  { %28 = dma.hbm_to_vmem [thread:$0]  %s1217_s0, 128, %s26_s16, [#allocation3]  }
  0x36   :  { %s1021_s14 = smov [#allocation7]   ;;  %s1022_s17 = smov [#allocation10]  }
  0x37   :  { %s44_s15 = sshll.u32 %s1021_s14, 4  ;;  %s68_s18 = sshll.u32 %s1022_s17, 4  ;;  %s45_s15 = int_to_ptr.vmem [resolvable:$true] %s44_s15  ;;  %s69_s18 = int_to_ptr.vmem [resolvable:$true] %s68_s18 }
  0x38   :  { %s894_s21 = scalar_lea.hbm %s1219_s2, 2048 }
  0x39   :  { %p895_p10 = scmp.ne.s32.totalorder %s1219_s2, %s894_s21  ;;  %p898_p11 = scmp.lt.u32.totalorder %s894_s21, %s1219_s2 }
  0x3b   :  { %p900_p12 = pnand %p898_p11, %p895_p10 }
  0x3d   :  { %903 = shalt.err (!%p900_p12)
}
  0x3e   :  { %s904_s0 = scalar_lea.vmem %s45_s15, 2048  ;;  %p909_p0 = scmp.lt.s32.totalorder %s45_s15, %s45_s15 }
  0x3f   :  { %p905_p13 = scmp.ne.s32.totalorder %s45_s15, %s904_s0  ;;  %p910_p1 = scmp.lt.s32.totalorder %s904_s0, %s904_s0 }
  0x41   :  { %p911_p2 = por %p910_p1, %p909_p0 }
  0x43   :  { %p912_p3 = pnand %p911_p2, %p905_p13 }
  0x45   :  { %915 = shalt.err (!%p912_p3)
}
  0x46   :  { %50 = dma.hbm_to_vmem [thread:$0]  %s1219_s2, 2048, %s45_s15, [#allocation6], %s1019_s24, %s1019_s24, %s1020_s25  }
  0x47   :  { %s916_s30 = scalar_lea.hbm %s1221_s4, 2048 }
  0x48   :  { %p917_p4 = scmp.ne.s32.totalorder %s1221_s4, %s916_s30  ;;  %p920_p5 = scmp.lt.u32.totalorder %s916_s30, %s1221_s4 }
  0x4a   :  { %p922_p6 = pnand %p920_p5, %p917_p4 }
  0x4c   :  { %925 = shalt.err (!%p922_p6)
}
  0x4d   :  { %s926_s12 = scalar_lea.vmem %s69_s18, 2048  ;;  %p931_p8 = scmp.lt.s32.totalorder %s69_s18, %s69_s18 }
  0x4e   :  { %p927_p7 = scmp.ne.s32.totalorder %s69_s18, %s926_s12  ;;  %p932_p9 = scmp.lt.s32.totalorder %s926_s12, %s926_s12 }
  0x50   :  { %p933_p10 = por %p932_p9, %p931_p8 }
  0x52   :  { %p934_p11 = pnand %p933_p10, %p927_p7 }
  0x54   :  { %937 = shalt.err (!%p934_p11)
}
  0x55   :  { %74 = dma.hbm_to_vmem [thread:$0]  %s1221_s4, 2048, %s69_s18, [#allocation9], %s1019_s24, %s1019_s24, %s1020_s25  }
  0x56   :  { %s1023_s13 = smov [#allocation11]   ;;  %s938_s19 = scalar_lea.hbm %s1222_s5, 2048 }
  0x57   :  { %s80_s14 = sshll.u32 %s1023_s13, 4  ;;  %p939_p12 = scmp.ne.s32.totalorder %s1222_s5, %s938_s19  ;;  %s81_s14 = int_to_ptr.vmem [resolvable:$true] %s80_s14 }
  0x58   :  { %p942_p13 = scmp.lt.u32.totalorder %s938_s19, %s1222_s5 }
  0x5a   :  { %p944_p0 = pnand %p942_p13, %p939_p12 }
  0x5c   :  { %947 = shalt.err (!%p944_p0)
}
  0x5d   :  { %s948_s1 = scalar_lea.vmem %s81_s14, 2048  ;;  %p953_p2 = scmp.lt.s32.totalorder %s81_s14, %s81_s14 }
  0x5e   :  { %p949_p1 = scmp.ne.s32.totalorder %s81_s14, %s948_s1  ;;  %p954_p3 = scmp.lt.s32.totalorder %s948_s1, %s948_s1 }
  0x60   :  { %p955_p4 = por %p954_p3, %p953_p2 }
  0x62   :  { %p956_p5 = pnand %p955_p4, %p949_p1 }
  0x64   :  { %959 = shalt.err (!%p956_p5)
}
  0x65   :  { %86 = dma.hbm_to_vmem [thread:$0]  %s1222_s5, 2048, %s81_s14, [#allocation12], %s1019_s24, %s1019_s24, %s1020_s25  }
  0x66   :  { %1004 = dma.done.wait [#allocation3], 128  }
  0x67   :  { %1005 = vsyncadd [#allocation3], 4294967168 }
  0x68   :  { %1006 = dma.done.wait [#allocation6], 2112  }
  0x69   :  { %1007 = vsyncadd [#allocation6], 4294965184 }
  0x6a   :  { %1008 = dma.done.wait [#allocation9], 4096  }
  0x6b   :  { %1009 = vsyncadd [#allocation9], 4294963200 }
  0x6c   :  { %1010 = dma.done.wait [#allocation12], 2048  }
  0x6d   :  { %1011 = vsyncadd [#allocation12], 4294965248  ;;  %v1024_v0 = vmov 0.0|0.0   ;;  %vm1025_vm0 = vmmov 0   ;;  %v1026_v1 = vmov 0.0   ;;  %v106_v2 = vld [vmem:[#allocation7] sm:$0xff] }
  0x6e   :  { %719 = vmatprep.subr.bf16.mxu0 %v1024_v0  ;;  %611 = vmatprep.mubr.msk.f32.mxu0 %vm1025_vm0, %v1026_v1  ;;  %v107_v3 = vld [vmem:[#allocation7 + $0x8] sm:$0xff]  ;;  %v108_v4 = vld [vmem:[#allocation7 + $0x10] sm:$0xff]  ;;  %v109_v6 = vld [vmem:[#allocation7 + $0x18] sm:$0xff]  ;;  %s1027_s5 = smov [#allocation14]  }
  0x6f   :  { %743 = vmatprep.subr.bf16.mxu1 %v1024_v0  ;;  %646 = vmatprep.mubr.msk.f32.mxu1 %vm1025_vm0, %v1026_v1  ;;  %v720_v5 = vpack.c.bf16 %v107_v3, %v106_v2  ;;  %v723_v7 = vpack.c.bf16 %v109_v6, %v108_v4  ;;  %v110_v8 = vld [vmem:[#allocation7 + $0x20] sm:$0xff]  ;;  %v111_v9 = vld [vmem:[#allocation7 + $0x28] sm:$0xff]  ;;  %v202_v12 = vld [vmem:[#allocation8 + $0x10] sm:$0xff]  ;;  %s491_s24 = sshll.u32 %s1027_s5, 4  ;;  %s492_s24 = int_to_ptr.vmem [resolvable:$true] %s491_s24 }
  0x70   :  { %v200_v10 = vld [vmem:[#allocation8] sm:$0xff]  ;;  %v201_v11 = vld [vmem:[#allocation8 + $0x8] sm:$0xff]  ;;  %v203_v13 = vld [vmem:[#allocation8 + $0x18] sm:$0xff]  ;;  %v726_v14 = vpack.c.bf16 %v111_v9, %v110_v8  ;;  %s960_s25 = scalar_lea.vmem %s492_s24, 128  ;;  %p965_p7 = scmp.lt.s32.totalorder %s492_s24, %s492_s24 }
  0x71   :  { %721 = vmatpush3.bf16.msra.mxu0 %v720_v5  ;;  %v744_v15 = vpack.c.bf16 %v201_v11, %v200_v10  ;;  %v112_v16 = vld [vmem:[#allocation7 + $0x30] sm:$0xff]  ;;  %v113_v17 = vld [vmem:[#allocation7 + $0x38] sm:$0xff]  ;;  %v747_v18 = vpack.c.bf16 %v203_v13, %v202_v12  ;;  %v204_v19 = vld [vmem:[#allocation8 + $0x20] sm:$0xff]  ;;  %p961_p6 = scmp.ne.s32.totalorder %s492_s24, %s960_s25  ;;  %p966_p8 = scmp.lt.s32.totalorder %s960_s25, %s960_s25 }
  0x72   :  { %722 = vmatprep.subr.bf16.mxu0 %v1024_v0  ;;  %v205_v20 = vld [vmem:[#allocation8 + $0x28] sm:$0xff]  ;;  %v729_v21 = vpack.c.bf16 %v113_v17, %v112_v16  ;;  %v114_v22 = vld [vmem:[#allocation7 + $0x40] sm:$0xff]  ;;  %v206_v25 = vld [vmem:[#allocation8 + $0x30] sm:$0xff] }
  0x73   :  { %745 = vmatpush3.bf16.msra.mxu1 %v744_v15  ;;  %v115_v23 = vld [vmem:[#allocation7 + $0x48] sm:$0xff]  ;;  %v750_v24 = vpack.c.bf16 %v205_v20, %v204_v19  ;;  %v207_v26 = vld [vmem:[#allocation8 + $0x38] sm:$0xff]  ;;  %v116_v28 = vld [vmem:[#allocation7 + $0x50] sm:$0xff]  ;;  %p967_p9 = por %p966_p8, %p965_p7 }
  0x74   :  { %746 = vmatprep.subr.bf16.mxu1 %v1024_v0  ;;  %v732_v27 = vpack.c.bf16 %v115_v23, %v114_v22  ;;  %v117_v29 = vld [vmem:[#allocation7 + $0x58] sm:$0xff]  ;;  %v753_v30 = vpack.c.bf16 %v207_v26, %v206_v25  ;;  %v208_v31 = vld [vmem:[#allocation8 + $0x40] sm:$0xff]  ;;  %v209_v32 = vld [vmem:[#allocation8 + $0x48] sm:$0xff] }
  0x75   :  { %724 = vmatpush3.bf16.msra.mxu0 %v723_v7  ;;  %v735_v33 = vpack.c.bf16 %v117_v29, %v116_v28  ;;  %v118_v34 = vld [vmem:[#allocation7 + $0x60] sm:$0xff]  ;;  %v119_v35 = vld [vmem:[#allocation7 + $0x68] sm:$0xff]  ;;  %v756_v36 = vpack.c.bf16 %v209_v32, %v208_v31  ;;  %v210_v37 = vld [vmem:[#allocation8 + $0x50] sm:$0xff]  ;;  %p968_p10 = pnand %p967_p9, %p961_p6 }
  0x76   :  { %725 = vmatprep.subr.bf16.mxu0 %v1024_v0  ;;  %v211_v38 = vld [vmem:[#allocation8 + $0x58] sm:$0xff]  ;;  %v738_v39 = vpack.c.bf16 %v119_v35, %v118_v34  ;;  %v120_v40 = vld [vmem:[#allocation7 + $0x70] sm:$0xff]  ;;  %v212_v43 = vld [vmem:[#allocation8 + $0x60] sm:$0xff] }
  0x77   :  { %748 = vmatpush3.bf16.msra.mxu1 %v747_v18  ;;  %v121_v41 = vld [vmem:[#allocation7 + $0x78] sm:$0xff]  ;;  %v759_v42 = vpack.c.bf16 %v211_v38, %v210_v37  ;;  %v213_v44 = vld [vmem:[#allocation8 + $0x68] sm:$0xff]  ;;  %v214_v48 = vld [vmem:[#allocation8 + $0x70] sm:$0xff] }
  0x78   :  { %749 = vmatprep.subr.bf16.mxu1 %v1024_v0  ;;  %v741_v45 = vpack.c.bf16 %v121_v41, %v120_v40  ;;  %v762_v46 = vpack.c.bf16 %v213_v44, %v212_v43  ;;  %v105_v47 = vld [vmem:[#allocation2] sm:$0xff]  ;;  %v292_v51 = vld [vmem:[#allocation10] sm:$0xff]  ;;  %v293_v52 = vld [vmem:[#allocation10 + $0x8] sm:$0xff] }
  0x79   :  { %727 = vmatpush3.bf16.msra.mxu0 %v726_v14  ;;  %v215_v49 = vld [vmem:[#allocation8 + $0x78] sm:$0xff]  ;;  %v294_v53 = vld [vmem:[#allocation10 + $0x10] sm:$0xff]  ;;  %v768_v54 = vpack.c.bf16 %v293_v52, %v292_v51  ;;  %v296_v57 = vld [vmem:[#allocation10 + $0x20] sm:$0xff] }
  0x7a   :  { %728 = vmatprep.subr.bf16.mxu0 %v1024_v0  ;;  %v765_v50 = vpack.c.bf16 %v215_v49, %v214_v48  ;;  %v295_v55 = vld [vmem:[#allocation10 + $0x18] sm:$0xff]  ;;  %v297_v58 = vld [vmem:[#allocation10 + $0x28] sm:$0xff]  ;;  %v298_v60 = vld [vmem:[#allocation10 + $0x30] sm:$0xff] }
  0x7b   :  { %751 = vmatpush3.bf16.msra.mxu1 %v750_v24  ;;  %v771_v56 = vpack.c.bf16 %v295_v55, %v294_v53  ;;  %v774_v59 = vpack.c.bf16 %v297_v58, %v296_v57  ;;  %v299_v61 = vld [vmem:[#allocation10 + $0x38] sm:$0xff]  ;;  %v300_v63 = vld [vmem:[#allocation10 + $0x40] sm:$0xff]  ;;  %v301_v2 = vld [vmem:[#allocation10 + $0x48] sm:$0xff] }
  0x7c   :  { %752 = vmatprep.subr.bf16.mxu1 %v1024_v0  ;;  %v777_v62 = vpack.c.bf16 %v299_v61, %v298_v60  ;;  %v780_v3 = vpack.c.bf16 %v301_v2, %v300_v63  ;;  %v302_v4 = vld [vmem:[#allocation10 + $0x50] sm:$0xff]  ;;  %v303_v5 = vld [vmem:[#allocation10 + $0x58] sm:$0xff]  ;;  %v304_v7 = vld [vmem:[#allocation10 + $0x60] sm:$0xff] }
  0x7d   :  { %730 = vmatpush3.bf16.msra.mxu0 %v729_v21  ;;  %v783_v6 = vpack.c.bf16 %v303_v5, %v302_v4  ;;  %v305_v8 = vld [vmem:[#allocation10 + $0x68] sm:$0xff]  ;;  %v507_v10 = vld [vmem:[#allocation5] ss:$0 sm:$0xff]  ;;  %v306_v16 = vld [vmem:[#allocation10 + $0x70] sm:$0xff] }
  0x7e   :  { %731 = vmatprep.subr.bf16.mxu0 %v1024_v0  ;;  %v786_v9 = vpack.c.bf16 %v305_v8, %v304_v7  ;;  %v307_v17 = vld [vmem:[#allocation10 + $0x78] sm:$0xff]  ;;  %v383_v19 = vld [vmem:[#allocation11] sm:$0xff]  ;;  %v384_v20 = vld [vmem:[#allocation11 + $0x8] sm:$0xff] }
  0x7f   :  { %754 = vmatpush3.bf16.msra.mxu1 %v753_v30  ;;  %v789_v18 = vpack.c.bf16 %v307_v17, %v306_v16  ;;  %v385_v21 = vld [vmem:[#allocation11 + $0x10] sm:$0xff]  ;;  %v792_v22 = vpack.c.bf16 %v384_v20, %v383_v19  ;;  %v386_v23 = vld [vmem:[#allocation11 + $0x18] sm:$0xff]  ;;  %v387_v25 = vld [vmem:[#allocation11 + $0x20] sm:$0xff] }
  0x80   :  { %755 = vmatprep.subr.bf16.mxu1 %v1024_v0  ;;  %v795_v24 = vpack.c.bf16 %v386_v23, %v385_v21  ;;  %v388_v26 = vld [vmem:[#allocation11 + $0x28] sm:$0xff]  ;;  %v390_v28 = vld [vmem:[#allocation11 + $0x38] sm:$0xff]  ;;  %v391_v30 = vld [vmem:[#allocation11 + $0x40] sm:$0xff] }
  0x81   :  { %733 = vmatpush3.bf16.msra.mxu0 %v732_v27  ;;  %v798_v27 = vpack.c.bf16 %v388_v26, %v387_v25  ;;  %v392_v31 = vld [vmem:[#allocation11 + $0x48] sm:$0xff]  ;;  %v394_v34 = vld [vmem:[#allocation11 + $0x58] sm:$0xff]  ;;  %v397_v43 = vld [vmem:[#allocation11 + $0x70] sm:$0xff] }
  0x82   :  { %734 = vmatprep.subr.bf16.mxu0 %v1024_v0  ;;  %v804_v32 = vpack.c.bf16 %v392_v31, %v391_v30  ;;  %v396_v37 = vld [vmem:[#allocation11 + $0x68] sm:$0xff]  ;;  %v398_v44 = vld [vmem:[#allocation11 + $0x78] sm:$0xff] }
  0x83   :  { %757 = vmatpush3.bf16.msra.mxu1 %v756_v36  ;;  %v395_v36 = vld [vmem:[#allocation11 + $0x60] sm:$0xff] }
  0x84   :  { %758 = vmatprep.subr.bf16.mxu1 %v1024_v0  ;;  %v810_v38 = vpack.c.bf16 %v396_v37, %v395_v36 }
  0x85   :  { %736 = vmatpush3.bf16.msra.mxu0 %v735_v33  ;;  %v393_v33 = vld [vmem:[#allocation11 + $0x50] sm:$0xff] }
  0x86   :  { %737 = vmatprep.subr.bf16.mxu0 %v1024_v0  ;;  %v807_v35 = vpack.c.bf16 %v394_v34, %v393_v33 }
  0x87   :  { %760 = vmatpush3.bf16.msra.mxu1 %v759_v42 }
  0x88   :  { %761 = vmatprep.subr.bf16.mxu1 %v1024_v0 }
  0x89   :  { %739 = vmatpush3.bf16.msra.mxu0 %v738_v39  ;;  %v508_v39 = vld [vmem:[#allocation5 + $0x1] ss:$0 sm:$0xff] }
  0x8a   :  { %740 = vmatprep.subr.bf16.mxu0 %v1024_v0 }
  0x8b   :  { %763 = vmatpush3.bf16.msra.mxu1 %v762_v46  ;;  %v509_v46 = vld [vmem:[#allocation5 + $0x2] ss:$0 sm:$0xff] }
  0x8c   :  { %764 = vmatprep.subr.bf16.mxu1 %v1024_v0 }
  0x8d   :  { %742 = vmatpush3.bf16.msra.mxu0 %v741_v45  ;;  %v813_v45 = vpack.c.bf16 %v398_v44, %v397_v43 }
  0x8e   :  { %767 = vmatprep.subr.bf16.mxu0 %v1024_v0 }
  0x8f   :  { %766 = vmatpush3.bf16.msra.mxu1 %v765_v50 }
  0x90   :  { %612 = vmatmul.mubr.f32.vlgmr.msra.gmra.mrb[0].mxu0 %v105_v47  ;;  %791 = vmatprep.subr.bf16.mxu1 %v1024_v0 }
  0x91   :  { %681 = vmatprep.mubr.msk.f32.mxu0 %vm1025_vm0, %v1026_v1  ;;  %769 = vmatpush3.bf16.msra.mxu0 %v768_v54 }
  0x92   :  { %770 = vmatprep.subr.bf16.mxu0 %v1024_v0 }
  0x95   :  { %772 = vmatpush3.bf16.msra.mxu0 %v771_v56 }
  0x96   :  { %773 = vmatprep.subr.bf16.mxu0 %v1024_v0 }
  0x99   :  { %775 = vmatpush3.bf16.msra.mxu0 %v774_v59 }
  0x9a   :  { %776 = vmatprep.subr.bf16.mxu0 %v1024_v0 }
  0x9d   :  { %778 = vmatpush3.bf16.msra.mxu0 %v777_v62 }
  0x9e   :  { %779 = vmatprep.subr.bf16.mxu0 %v1024_v0 }
  0xa1   :  { %781 = vmatpush3.bf16.msra.mxu0 %v780_v3 }
  0xa2   :  { %782 = vmatprep.subr.bf16.mxu0 %v1024_v0 }
  0xa5   :  { %784 = vmatpush3.bf16.msra.mxu0 %v783_v6 }
  0xa6   :  { %785 = vmatprep.subr.bf16.mxu0 %v1024_v0 }
  0xa9   :  { %787 = vmatpush3.bf16.msra.mxu0 %v786_v9 }
  0xaa   :  { %788 = vmatprep.subr.bf16.mxu0 %v1024_v0 }
  0xad   :  { %790 = vmatpush3.bf16.msra.mxu0 %v789_v18 }
 0x163   :  { %v193_v11 = vpop.f32.mrb[0].mxu0 }
 0x164   :  { %v194_v12 = vadd.f32 %v507_v10, %v193_v11  ;;  %v613_v13 = vpop.f32.mrb[1].mxu0 }
 0x166   :  { %v198_v14 = vmul.f32 0.2, %v194_v12  ;;  %vm197_vm1 = vcmp.gt.f32.partialorder %v194_v12, 0.0 }
 0x168   :  { %v199_v15 = vsel %vm197_vm1, %v194_v12, %v198_v14 }
 0x169   :  { %647 = vmatmul.mubr.f32.vlgmr.msra.gmra.mrb[0].mxu1 %v199_v15 }
 0x16a   :  { %716 = vmatprep.mubr.msk.f32.mxu1 %vm1025_vm0, %v1026_v1  ;;  %793 = vmatpush3.bf16.msra.mxu1 %v792_v22  ;;  %v389_v1 = vld [vmem:[#allocation11 + $0x30] sm:$0xff] }
 0x16b   :  { %794 = vmatprep.subr.bf16.mxu1 %v1024_v0  ;;  %v801_v29 = vpack.c.bf16 %v390_v28, %v389_v1 }
 0x16e   :  { %796 = vmatpush3.bf16.msra.mxu1 %v795_v24 }
 0x16f   :  { %797 = vmatprep.subr.bf16.mxu1 %v1024_v0 }
 0x172   :  { %799 = vmatpush3.bf16.msra.mxu1 %v798_v27 }
 0x173   :  { %800 = vmatprep.subr.bf16.mxu1 %v1024_v0 }
 0x176   :  { %802 = vmatpush3.bf16.msra.mxu1 %v801_v29 }
 0x177   :  { %803 = vmatprep.subr.bf16.mxu1 %v1024_v0 }
 0x17a   :  { %805 = vmatpush3.bf16.msra.mxu1 %v804_v32 }
 0x17b   :  { %806 = vmatprep.subr.bf16.mxu1 %v1024_v0 }
 0x17e   :  { %808 = vmatpush3.bf16.msra.mxu1 %v807_v35 }
 0x17f   :  { %809 = vmatprep.subr.bf16.mxu1 %v1024_v0 }
 0x182   :  { %811 = vmatpush3.bf16.msra.mxu1 %v810_v38 }
 0x183   :  { %812 = vmatprep.subr.bf16.mxu1 %v1024_v0 }
 0x186   :  { %814 = vmatpush3.bf16.msra.mxu1 %v813_v45 }
 0x23c   :  { %v287_v40 = vpop.f32.mrb[0].mxu1 }
 0x23d   :  { %v288_v41 = vadd.f32 %v508_v39, %v287_v40  ;;  %v648_v42 = vpop.f32.mrb[1].mxu1 }
 0x23f   :  { %291 = vst [vmem:[#allocation14] sm:$0xff] %v288_v41  ;;  %682 = vmatmul.mubr.f32.vlgmr.msra.gmra.mrb[2].mxu0 %v288_v41 }
 0x312   :  { %v379_v47 = vpop.f32.mrb[2].mxu0 }
 0x313   :  { %v380_v48 = vadd.f32 %v509_v46, %v379_v47  ;;  %v683_v49 = vpop.f32.mrb[3].mxu0 }
 0x315   :  { %717 = vmatmul.mubr.f32.vlgmr.msra.gmra.mrb[2].mxu1 %v380_v48 }
 0x316   :  { %971 = shalt.err (!%p968_p10)
}
 0x317   :  { %s972_s16 = scalar_lea.hbm %s1224_s7, 128 }
 0x318   :  { %p973_p11 = scmp.ne.s32.totalorder %s1224_s7, %s972_s16  ;;  %p976_p12 = scmp.lt.u32.totalorder %s972_s16, %s1224_s7 }
 0x31a   :  { %p978_p13 = pnand %p976_p12, %p973_p11 }
 0x31c   :  { %981 = shalt.err (!%p978_p13)
}
 0x31d   :  { %494 = dma.vmem_to_hbm [thread:$0]  %s492_s24, 128, %s1224_s7, [#allocation15]   ;;  %v510_v0 = vld [vmem:[#allocation5 + $0x3] ss:$0 sm:$0xff] }
 0x31e   :  { %s1028_s10 = smov [#allocation13]  }
 0x31f   :  { %s481_s11 = sshll.u32 %s1028_s10, 4  ;;  %s482_s11 = int_to_ptr.vmem [resolvable:$true] %s481_s11 }
 0x320   :  { %s982_s12 = scalar_lea.vmem %s482_s11, 128  ;;  %p987_p1 = scmp.lt.s32.totalorder %s482_s11, %s482_s11 }
 0x321   :  { %p983_p0 = scmp.ne.s32.totalorder %s482_s11, %s982_s12  ;;  %p988_p2 = scmp.lt.s32.totalorder %s982_s12, %s982_s12 }
 0x323   :  { %p989_p3 = por %p988_p2, %p987_p1 }
 0x325   :  { %p990_p4 = pnand %p989_p3, %p983_p0 }
 0x3e8   :  { %v470_v50 = vpop.f32.mrb[2].mxu1 }
 0x3e9   :  { %v471_v51 = vadd.f32 %v510_v0, %v470_v50  ;;  %v718_v52 = vpop.f32.mrb[3].mxu1 }
 0x3eb   :  { %474 = vst [vmem:[#allocation13] sm:$0xff] %v471_v51 }
 0x3ec   :  { %993 = shalt.err (!%p990_p4)
}
 0x3ed   :  { %s994_s13 = scalar_lea.hbm %s1223_s6, 128 }
 0x3ee   :  { %p995_p5 = scmp.ne.s32.totalorder %s1223_s6, %s994_s13  ;;  %p998_p6 = scmp.lt.u32.totalorder %s994_s13, %s1223_s6 }
 0x3f0   :  { %p1000_p7 = pnand %p998_p6, %p995_p5 }
 0x3f2   :  { %1003 = shalt.err (!%p1000_p7)
}
 0x3f3   :  { %484 = dma.vmem_to_hbm [thread:$0]  %s482_s11, 128, %s1223_s6, [#allocation4]  }
 0x3f4   :  { %1012 = dma.done.wait [#allocation4], 128  }
 0x3f5   :  { %1013 = vsyncadd [#allocation4], 4294967168 }
 0x3f6   :  { %1014 = dma.done.wait [#allocation15], 128  }
 0x3f7   :  { %1015 = vsyncadd [#allocation15], 4294967168 }
 0x3f8   :  { %501 = vsyncpa [#allocation3], 1 }
 0x3f9   :  { %502 = vsyncpa [#allocation6], 1 }
 0x3fa   :  { %503 = vsyncpa [#allocation9], 1 }
 0x3fb   :  { %504 = vsyncpa [#allocation12], 1 }
 0x3fc   :  { %505 = vsyncpa [#allocation4], 1 }
 0x3fd   :  { %506 = vsyncpa [#allocation15], 1 }

</bundles_post_ra>
